<compile_context>
chip_gen: v7x
topology: tpu7x:2x2x1
jax: 0.10.0
libtpu: 0.0.40
codegen_flags: <defaults>
</compile_context>

<pallas_src>
import jax
import jax.numpy as jnp
from jax.experimental import pallas as pl
from jax.experimental.pallas import tpu as pltpu


def _round_up(n, m):
    return ((n + m - 1) // m) * m


def _cdiv(a, b):
    return (a + b - 1) // b


def _pad_to(arr, shape):
    """Zero-pad `arr` up to `shape` (no-op if already that shape)."""
    if tuple(arr.shape) == tuple(shape):
        return arr
    idx = tuple(slice(0, s) for s in arr.shape)
    return jnp.zeros(shape, arr.dtype).at[idx].set(arr)


def _vmem_capacity_bytes():
    try:
        cap = getattr(pltpu.get_tpu_info(), "vmem_capacity_bytes", None)
        if cap:
            return int(cap)
    except Exception:
        pass
    return 64 * 1024 * 1024  # conservative fallback: v7x per-TC VMEM


def _mlp_kernel(x_ref, w1_ref, b1_ref, w2_ref, b2_ref, o_ref):
    # fc1: bf16 @ bf16 on the MXU, f32 accumulation.
    h = jnp.dot(x_ref[...], w1_ref[...], preferred_element_type=jnp.float32)
    # Bias add + ReLU in f32 on the VPU.
    h = jnp.maximum(h + b1_ref[...], 0.0)
    # fc2: cast activations to bf16 for the MXU, f32 accumulation.
    y = jnp.dot(h.astype(w2_ref.dtype), w2_ref[...],
                preferred_element_type=jnp.float32)
    o_ref[...] = (y + b2_ref[...]).astype(o_ref.dtype)
    # TODO(synk): if a bundle dump shows the MXU idle between the two dots,
    # split the batch tile into 2-4 sub-chunks with lax.fori_loop(unroll=True)
    # so the bias/ReLU/cast of chunk i overlaps the fc1 matmul of chunk i+1.


def prepare_params(fc1_w, fc1_b, fc2_w, fc2_b):
    """One-time weight prep (hoisted out of the per-call wrapper).

    Transposes PyTorch (out, in) Linear weights to (in, out), casts to bf16
    and zero-pads the lane dims (hidden / output) to 128 multiples so the
    kernel sees dense, MXU-friendly operands.  Call once; reuse per forward.
    """
    hidden, d_in = fc1_w.shape
    d_out, _ = fc2_w.shape
    h_p = _round_up(hidden, 128)
    d_out_p = _round_up(d_out, 128)
    bf16, f32 = jnp.bfloat16, jnp.float32

    w1 = _pad_to(fc1_w.T.astype(bf16), (d_in, h_p))
    b1 = _pad_to(fc1_b.astype(f32).reshape(1, hidden), (1, h_p))
    w2 = _pad_to(fc2_w.T.astype(bf16), (h_p, d_out_p))
    b2 = _pad_to(fc2_b.astype(f32).reshape(1, d_out), (1, d_out_p))
    return {
        "w1": w1, "b1": b1, "w2": w2, "b2": b2,
        "d_in": d_in, "hidden": hidden, "d_out": d_out,
        "h_p": h_p, "d_out_p": d_out_p,
    }


def recovered_nn_forward(x, params, *, block_b=512):
    """y = relu(x @ fc1_w.T + fc1_b) @ fc2_w.T + fc2_b, fused in one kernel."""
    B, d_in = x.shape
    assert d_in == params["d_in"]
    hidden, d_out = params["hidden"], params["d_out"]
    h_p, d_out_p = params["h_p"], params["d_out_p"]
    w1, b1, w2, b2 = params["w1"], params["b1"], params["w2"], params["b2"]
    f32 = jnp.float32

    # Generation-aware VMEM budget (v5e/v6e: 128 MiB, v7x: 64 MiB per TC).
    vmem_budget = (_vmem_capacity_bytes() * 3) // 4

    # Per-step VMEM: single-buffered resident weights/biases, double-buffered
    # streamed x / out tiles, in-kernel intermediates.
    def vmem_bytes(tb):
        return (2 * tb * d_in * 2                      # x tiles (bf16, 2 bufs)
                + 2 * tb * d_out_p * 4                 # out tiles (f32, 2 bufs)
                + (d_in * h_p + h_p * d_out_p) * 2     # resident weights (bf16, 1 buf)
                + (h_p + d_out_p) * 4                  # resident biases (f32, 1 buf)
                + tb * h_p * (4 + 2)                   # f32 h + bf16 cast copy
                + tb * d_out_p * 4)                    # f32 y before store

    # Batch tile: multiple of 16 (bf16 sublane packing); aim for >=4 grid
    # steps when B allows (>=2 per TC on v7x), minimize batch padding, and
    # shrink if the per-step footprint overflows the VMEM budget.
    n_steps = max(4, _cdiv(B, block_b))
    tb = max(16, min(block_b, _round_up(_cdiv(B, n_steps), 16)))
    while tb > 16 and vmem_bytes(tb) > vmem_budget:
        tb = max(16, _round_up(tb // 2, 16))
    b_p = _round_up(B, tb)
    grid = (b_p // tb,)
    # TODO(synk): if the weights alone overflow vmem_budget (very large hidden
    # on v7x), add an H-tiled "arbitrary" grid axis with a (tb, d_out_p) f32
    # VMEM accumulator and pl.when init/finalize instead of resident W1/W2.

    vmem_limit = int(min(max(2 * vmem_bytes(tb), 16 * 1024 * 1024), vmem_budget))

    # x: cast to bf16 (halves HBM traffic); pad batch rows only when needed.
    # d_in stays unpadded — block last dim equals the full array dim (legal),
    # Mosaic pads in-vreg, so no extra padded HBM roundtrip of x.
    xb = _pad_to(x.astype(jnp.bfloat16), (b_p, d_in))

    # True (unpadded) flops / bytes so the scheduler hint isn't inflated.
    cost = pl.CostEstimate(
        flops=2 * B * (d_in * hidden + hidden * d_out),
        transcendentals=0,
        bytes_accessed=(B * d_in * 2 + (d_in * hidden + hidden * d_out) * 2
                        + (hidden + d_out) * 4 + B * d_out * 4),
    )

    resident = dict(pipeline_mode=pl.Buffered(1))  # constant index_map -> 1 buffer

    out = pl.pallas_call(
        _mlp_kernel,
        out_shape=jax.ShapeDtypeStruct((b_p, d_out_p), f32),
        grid_spec=pltpu.PrefetchScalarGridSpec(
            num_scalar_prefetch=0,
            grid=grid,
            in_specs=[
                pl.BlockSpec((tb, d_in), lambda i: (i, 0)),                  # x: streamed
                pl.BlockSpec((d_in, h_p), lambda i: (0, 0), **resident),     # W1: resident
                pl.BlockSpec((1, h_p), lambda i: (0, 0), **resident),        # b1: resident
                pl.BlockSpec((h_p, d_out_p), lambda i: (0, 0), **resident),  # W2: resident
                pl.BlockSpec((1, d_out_p), lambda i: (0, 0), **resident),    # b2: resident
            ],
            out_specs=pl.BlockSpec((tb, d_out_p), lambda i: (i, 0)),
        ),
        compiler_params=pltpu.CompilerParams(
            dimension_semantics=("parallel",),   # megacore sharding on v7x
            vmem_limit_bytes=vmem_limit,
        ),
        cost_estimate=cost,
    )(xb, w1, b1, w2, b2)

    # Slice off batch / output-lane padding only when it exists.
    if b_p != B or d_out_p != d_out:
        out = out[:B, :d_out]
    return out


if __name__ == "__main__":
    # Small shapes consistent with the module: sizes = input-hidden-output.
    batch, input_dim, hidden_dim, output_dim = 8, 16, 32, 8

    key = jax.random.PRNGKey(0)
    kx, k1, k2, k3, k4 = jax.random.split(key, 5)
    x = jax.random.normal(kx, (batch, input_dim), jnp.float32)

    # PyTorch-default-style Linear init (uniform +/- 1/sqrt(fan_in)).
    lim1 = 1.0 / (input_dim ** 0.5)
    lim2 = 1.0 / (hidden_dim ** 0.5)
    fc1_w = jax.random.uniform(k1, (hidden_dim, input_dim), jnp.float32, -lim1, lim1)
    fc1_b = jax.random.uniform(k2, (hidden_dim,), jnp.float32, -lim1, lim1)
    fc2_w = jax.random.uniform(k3, (output_dim, hidden_dim), jnp.float32, -lim2, lim2)
    fc2_b = jax.random.uniform(k4, (output_dim,), jnp.float32, -lim2, lim2)

    params = prepare_params(fc1_w, fc1_b, fc2_w, fc2_b)   # one-time weight prep
    out = recovered_nn_forward(x, params)
    out = jax.block_until_ready(out)

    # Reference in plain f32 JAX (same semantics as the PyTorch forward).
    ref = jnp.maximum(x @ fc1_w.T + fc1_b, 0.0) @ fc2_w.T + fc2_b
    assert out.shape == (batch, output_dim)
    # bf16 MXU operands -> loosen tolerance vs the f32 reference.
    assert jnp.allclose(out, ref, atol=2e-2, rtol=2e-2), \
        float(jnp.max(jnp.abs(out - ref)))

    print("KERNEL_OK")
</pallas_src>

<mosaic_0001>
module attributes {stable_mosaic.version = 11 : i64} {
  func.func @_mlp_kernel(%arg0: i32, %arg1: memref<16x16xbf16, #tpu.memory_space<vmem>>, %arg2: memref<16x128xbf16, #tpu.memory_space<vmem>>, %arg3: memref<1x128xf32, #tpu.memory_space<vmem>>, %arg4: memref<128x128xbf16, #tpu.memory_space<vmem>>, %arg5: memref<1x128xf32, #tpu.memory_space<vmem>>, %arg6: memref<16x128xf32, #tpu.memory_space<vmem>>) attributes {dimension_semantics = [#tpu.dimension_semantics<parallel>], iteration_bounds = array<i64: 1>, scalar_prefetch = 0 : i64, scratch_operands = 0 : i64, tpu.core_type = #tpu.core_type<tc>, window_params = [{transform_indices = @transform_0, window_bounds = array<i64: 16, 16>}, {pipeline_mode = #tpu.pipeline_mode<synchronous>, transform_indices = @transform_1, window_bounds = array<i64: 16, 128>}, {pipeline_mode = #tpu.pipeline_mode<synchronous>, transform_indices = @transform_2, window_bounds = array<i64: 1, 128>}, {pipeline_mode = #tpu.pipeline_mode<synchronous>, transform_indices = @transform_3, window_bounds = array<i64: 128, 128>}, {pipeline_mode = #tpu.pipeline_mode<synchronous>, transform_indices = @transform_4, window_bounds = array<i64: 1, 128>}, {transform_indices = @transform_5, window_bounds = array<i64: 16, 128>}]} {
    %c0 = arith.constant 0 : index
    %c0_0 = arith.constant 0 : index
    %0 = vector.load %arg1[%c0, %c0_0] : memref<16x16xbf16, #tpu.memory_space<vmem>>, vector<16x16xbf16>
    %c0_1 = arith.constant 0 : index
    %c0_2 = arith.constant 0 : index
    %1 = vector.load %arg2[%c0_1, %c0_2] : memref<16x128xbf16, #tpu.memory_space<vmem>>, vector<16x128xbf16>
    %cst = arith.constant dense<0.000000e+00> : vector<16x128xf32>
    %2 = tpu.matmul %0, %1, %cst {dimension_numbers = #tpu.dot_dimension_numbers<[1], [0], [0], [1], [0, 0, 1, 1], [], []>} : vector<16x16xbf16>, vector<16x128xbf16>, vector<16x128xf32> -> vector<16x128xf32>
    %c0_3 = arith.constant 0 : index
    %c0_4 = arith.constant 0 : index
    %3 = vector.load %arg3[%c0_3, %c0_4] : memref<1x128xf32, #tpu.memory_space<vmem>>, vector<1x128xf32>
    %4 = vector.broadcast %3 : vector<1x128xf32> to vector<16x128xf32>
    %5 = arith.addf %2, %4 : vector<16x128xf32>
    %cst_5 = arith.constant 0.000000e+00 : f32
    %6 = vector.broadcast %cst_5 : f32 to vector<16x128xf32>
    %7 = arith.maximumf %5, %6 : vector<16x128xf32>
    %8 = arith.truncf %7 : vector<16x128xf32> to vector<16x128xbf16>
    %c0_6 = arith.constant 0 : index
    %c0_7 = arith.constant 0 : index
    %9 = vector.load %arg4[%c0_6, %c0_7] : memref<128x128xbf16, #tpu.memory_space<vmem>>, vector<128x128xbf16>
    %cst_8 = arith.constant dense<0.000000e+00> : vector<16x128xf32>
    %10 = tpu.matmul %8, %9, %cst_8 {dimension_numbers = #tpu.dot_dimension_numbers<[1], [0], [0], [1], [0, 0, 1, 1], [], []>} : vector<16x128xbf16>, vector<128x128xbf16>, vector<16x128xf32> -> vector<16x128xf32>
    %c0_9 = arith.constant 0 : index
    %c0_10 = arith.constant 0 : index
    %11 = vector.load %arg5[%c0_9, %c0_10] : memref<1x128xf32, #tpu.memory_space<vmem>>, vector<1x128xf32>
    %12 = vector.broadcast %11 : vector<1x128xf32> to vector<16x128xf32>
    %13 = arith.addf %10, %12 : vector<16x128xf32>
    %c0_11 = arith.constant 0 : index
    %c0_12 = arith.constant 0 : index
    %14 = vector.load %arg6[%c0_11, %c0_12] : memref<16x128xf32, #tpu.memory_space<vmem>>, vector<16x128xf32>
    tpu.vector_store %arg6[%c0_11, %c0_12], %13 {strides = array<i32>} : memref<16x128xf32, #tpu.memory_space<vmem>>, vector<16x128xf32>,
    return
  }
  func.func @transform_0(%arg0: i32) -> (i32, i32) {
    %c0_i32 = arith.constant 0 : i32
    %c0_i32_0 = arith.constant 0 : i32
    return %arg0, %c0_i32 : i32, i32
  }
  func.func @transform_1(%arg0: i32) -> (i32, i32) {
    %c0_i32 = arith.constant 0 : i32
    %c0_i32_0 = arith.constant 0 : i32
    %c0_i32_1 = arith.constant 0 : i32
    return %c0_i32, %c0_i32_0 : i32, i32
  }
  func.func @transform_2(%arg0: i32) -> (i32, i32) {
    %c0_i32 = arith.constant 0 : i32
    %c0_i32_0 = arith.constant 0 : i32
    %c0_i32_1 = arith.constant 0 : i32
    return %c0_i32, %c0_i32_0 : i32, i32
  }
  func.func @transform_3(%arg0: i32) -> (i32, i32) {
    %c0_i32 = arith.constant 0 : i32
    %c0_i32_0 = arith.constant 0 : i32
    %c0_i32_1 = arith.constant 0 : i32
    return %c0_i32, %c0_i32_0 : i32, i32
  }
  func.func @transform_4(%arg0: i32) -> (i32, i32) {
    %c0_i32 = arith.constant 0 : i32
    %c0_i32_0 = arith.constant 0 : i32
    %c0_i32_1 = arith.constant 0 : i32
    return %c0_i32, %c0_i32_0 : i32, i32
  }
  func.func @transform_5(%arg0: i32) -> (i32, i32) {
    %c0_i32 = arith.constant 0 : i32
    %c0_i32_0 = arith.constant 0 : i32
    return %arg0, %c0_i32 : i32, i32
  }
}

</mosaic_0001>

<bundles_post_ra>
// kernel: tpu_custom_call.1
= control target key start
LH: loop header
LB: loop body
LE: loop exit
PB: predicated region body
PF: predicated region fallthrough
CT: control target
= control target key end

     0   :  { %10 = vsyncpa [#allocation3], 0  ;;  %s539_s0 = inlined_call_operand.hbm [shape: bf16[16,16], index: 0, kind: input, shape index: {}]   ;;  %s540_s1 = inlined_call_operand.hbm [shape: bf16[16,128], index: 1, kind: input, shape index: {}]   ;;  %s541_s2 = inlined_call_operand.vmem [shape: f32[1,128], index: 2, kind: input, shape index: {}]   ;;  %s542_s3 = inlined_call_operand.hbm [shape: bf16[128,128], index: 3, kind: input, shape index: {}]   ;;  %s543_s4 = inlined_call_operand.vmem [shape: f32[1,128], index: 4, kind: input, shape index: {}]   ;;  %s544_s5 = inlined_call_operand.hbm [shape: f32[16,128], index: 5, kind: output, shape index: {}]  }
   0x1   :  { %11 = vsyncpa [#allocation6], 0 }
   0x2   :  { %12 = vsyncpa [#allocation4], 0  ;;  %s429_s18 = smov [#allocation5]   ;;  %s430_s20 = smov [#allocation2]  }
   0x3   :  { %s30_s19 = sshll.u32 %s429_s18, 4  ;;  %s18_s21 = sshll.u32 %s430_s20, 4  ;;  %s31_s19 = int_to_ptr.vmem [resolvable:$true] %s30_s19  ;;  %s469_s21 = int_to_ptr.vmem [resolvable:$true] %s18_s21 }
   0x4   :  { %s335_s24 = scalar_lea.hbm %s540_s1, 128 }
   0x5   :  { %p336_p0 = scmp.ne.s32.totalorder %s540_s1, %s335_s24  ;;  %p339_p1 = scmp.lt.u32.totalorder %s335_s24, %s540_s1 }
   0x7   :  { %p341_p2 = pnand %p339_p1, %p336_p0 }
   0x9   :  { %344 = shalt.err (!%p341_p2)
}
   0xa   :  { %s345_s29 = scalar_lea.vmem %s31_s19, 128  ;;  %p350_p4 = scmp.lt.s32.totalorder %s31_s19, %s31_s19 }
   0xb   :  { %p346_p3 = scmp.ne.s32.totalorder %s31_s19, %s345_s29  ;;  %p351_p5 = scmp.lt.s32.totalorder %s345_s29, %s345_s29 }
   0xd   :  { %p352_p6 = por %p351_p5, %p350_p4 }
   0xf   :  { %p353_p7 = pnand %p352_p6, %p346_p3 }
  0x11   :  { %356 = shalt.err (!%p353_p7)
}
  0x12   :  { %s431_s30 = smov 64   ;;  %s432_s6 = smov 4  }
  0x13   :  { %36 = dma.hbm_to_vmem [thread:$0]  %s540_s1, 128, %s31_s19, [#allocation6], %s431_s30, %s431_s30, %s432_s6  }
  0x14   :  { %s357_s11 = scalar_lea.hbm %s539_s0, 128 }
  0x15   :  { %p358_p8 = scmp.ne.s32.totalorder %s539_s0, %s357_s11  ;;  %p361_p9 = scmp.lt.u32.totalorder %s357_s11, %s539_s0 }
  0x17   :  { %p363_p10 = pnand %p361_p9, %p358_p8 }
  0x19   :  { %366 = shalt.err (!%p363_p10)
}
  0x1a   :  { %s367_s16 = scalar_lea.vmem %s469_s21, 128  ;;  %p372_p12 = scmp.lt.s32.totalorder %s469_s21, %s469_s21 }
  0x1b   :  { %p368_p11 = scmp.ne.s32.totalorder %s469_s21, %s367_s16  ;;  %p373_p13 = scmp.lt.s32.totalorder %s367_s16, %s367_s16 }
  0x1d   :  { %p374_p0 = por %p373_p13, %p372_p12 }
  0x1f   :  { %p375_p1 = pnand %p374_p0, %p368_p11 }
  0x21   :  { %378 = shalt.err (!%p375_p1)
}
  0x22   :  { %24 = dma.hbm_to_vmem [thread:$0]  %s539_s0, 128, %s469_s21, [#allocation3], %s431_s30, %s431_s30, %s432_s6  }
  0x23   :  { %s433_s18 = smov [#allocation7]   ;;  %s379_s23 = scalar_lea.hbm %s542_s3, 1024 }
  0x24   :  { %s44_s19 = sshll.u32 %s433_s18, 4  ;;  %p380_p2 = scmp.ne.s32.totalorder %s542_s3, %s379_s23  ;;  %s45_s19 = int_to_ptr.vmem [resolvable:$true] %s44_s19 }
  0x25   :  { %p383_p3 = scmp.lt.u32.totalorder %s379_s23, %s542_s3 }
  0x27   :  { %p385_p4 = pnand %p383_p3, %p380_p2 }
  0x29   :  { %388 = shalt.err (!%p385_p4)
}
  0x2a   :  { %s389_s28 = scalar_lea.vmem %s45_s19, 1024  ;;  %p394_p6 = scmp.lt.s32.totalorder %s45_s19, %s45_s19 }
  0x2b   :  { %p390_p5 = scmp.ne.s32.totalorder %s45_s19, %s389_s28  ;;  %p395_p7 = scmp.lt.s32.totalorder %s389_s28, %s389_s28 }
  0x2d   :  { %p396_p8 = por %p395_p7, %p394_p6 }
  0x2f   :  { %p397_p9 = pnand %p396_p8, %p390_p5 }
  0x31   :  { %400 = shalt.err (!%p397_p9)
}
  0x32   :  { %50 = dma.hbm_to_vmem [thread:$0]  %s542_s3, 1024, %s45_s19, [#allocation6], %s431_s30, %s431_s30, %s432_s6  }
  0x33   :  { %423 = dma.done.wait [#allocation3], 128  }
  0x34   :  { %424 = vsyncadd [#allocation3], 4294967168 }
  0x35   :  { %425 = dma.done.wait [#allocation6], 1152  }
  0x36   :  { %426 = vsyncadd [#allocation6], 4294966144  ;;  %v434_v0 = vmov 0.0   ;;  %vm435_vm0 = vmmov 0   ;;  %v325_v1 = vld [vmem:[#allocation5] sm:$0xff]   ;;  %v326_v2 = vld [vmem:[#allocation2] sm:$0xff]  }
  0x37   :  { %289 = vmatprep.subr.bf16.mxu0 %v434_v0  ;;  %291 = vmatprep.mubr.msk.bf16.mxu0 %vm435_vm0, %v434_v0  ;;  %vm85_vm1 = vcmask 130048   ;;  %v327_v3 = vld [vmem:[#allocation7] sm:$0xff]   ;;  %v328_v4 = vld [vmem:[#allocation7 + $0x8] sm:$0xff]   ;;  %v329_v5 = vld [vmem:[#allocation7 + $0x10] sm:$0xff]   ;;  %s436_s7 = smov [#allocation8]  }
  0x38   :  { %295 = vmatprep.subr.bf16.mxu1 %v434_v0  ;;  %311 = vmatprep.mubr.msk.bf16.mxu1 %vm435_vm0, %v434_v0  ;;  %v330_v6 = vld [vmem:[#allocation7 + $0x18] sm:$0xff]   ;;  %v331_v7 = vld [vmem:[#allocation7 + $0x20] sm:$0xff]   ;;  %v332_v8 = vld [vmem:[#allocation7 + $0x28] sm:$0xff]   ;;  %s252_s8 = sshll.u32 %s436_s7, 4  ;;  %s253_s8 = int_to_ptr.vmem [resolvable:$true] %s252_s8 }
  0x39   :  { %290 = vmatpush3.bf16.msra.mxu0 %v325_v1  ;;  %296 = vmatpush3.bf16.msra.mxu1 %v327_v3  ;;  %v333_v9 = vld [vmem:[#allocation7 + $0x30] sm:$0xff]   ;;  %v334_v10 = vld [vmem:[#allocation7 + $0x38] sm:$0xff]   ;;  %p406_p11 = scmp.lt.s32.totalorder %s253_s8, %s253_s8 }
  0x3a   :  { %297 = vmatprep.subr.bf16.mxu1 %v434_v0  ;;  %v265_v11 = vld [vmem:[%s541_s2] ss:$0 sm:$0xff]  ;;  %s401_s2 = scalar_lea.vmem %s253_s8, 256 }
  0x3b   :  { %v269_v21 = vld [vmem:[%s543_s4] ss:$0 sm:$0xff]  ;;  %p402_p10 = scmp.ne.s32.totalorder %s253_s8, %s401_s2  ;;  %p407_p12 = scmp.lt.s32.totalorder %s401_s2, %s401_s2 }
  0x3c   :  { %292 = vmatmul.mubr.msk.bf16.vlgmr.msra.gmra.mrb[0].mxu0 %vm85_vm1, %v326_v2 }
  0x3d   :  { %298 = vmatpush3.bf16.msra.mxu1 %v328_v4  ;;  %p408_p13 = por %p407_p12, %p406_p11 }
  0x3e   :  { %299 = vmatprep.subr.bf16.mxu1 %v434_v0 }
  0x3f   :  { %p409_p0 = pnand %p408_p13, %p402_p10 }
  0x41   :  { %300 = vmatpush3.bf16.msra.mxu1 %v329_v5 }
  0x42   :  { %301 = vmatprep.subr.bf16.mxu1 %v434_v0 }
  0x45   :  { %302 = vmatpush3.bf16.msra.mxu1 %v330_v6 }
  0x46   :  { %303 = vmatprep.subr.bf16.mxu1 %v434_v0 }
  0x49   :  { %304 = vmatpush3.bf16.msra.mxu1 %v331_v7 }
  0x4a   :  { %305 = vmatprep.subr.bf16.mxu1 %v434_v0 }
  0x4d   :  { %306 = vmatpush3.bf16.msra.mxu1 %v332_v8 }
  0x4e   :  { %307 = vmatprep.subr.bf16.mxu1 %v434_v0 }
  0x51   :  { %308 = vmatpush3.bf16.msra.mxu1 %v333_v9 }
  0x52   :  { %309 = vmatprep.subr.bf16.mxu1 %v434_v0 }
  0x55   :  { %310 = vmatpush3.bf16.msra.mxu1 %v334_v10 }
 0x10f   :  { %v123_v12 = vpop.f32.mrb[0].mxu0 }
 0x110   :  { %v124_v13 = vadd.f32 %v265_v11, %v123_v12  ;;  %v293_v14 = vpop.f32.mrb[1].mxu0 }
 0x111   :  { %v126_v15 = vpop.f32.mrb[2].mxu0 }
 0x112   :  { %v127_v16 = vadd.f32 %v265_v11, %v126_v15  ;;  %v294_v17 = vpop.f32.mrb[3].mxu0  ;;  %v130_v18 = vmax.f32 %v124_v13, 0.0 }
 0x114   :  { %v131_v19 = vmax.f32 %v127_v16, 0.0 }
 0x116   :  { %v132_v20 = vpack.c.bf16 %v131_v19, %v130_v18 }
 0x118   :  { %312 = vmatmul.mubr.bf16.vlgmr.msra.gmra.mrb[0].mxu1 %v132_v20 }
 0x1eb   :  { %v238_v22 = vpop.f32.mrb[0].mxu1 }
 0x1ec   :  { %v239_v23 = vadd.f32 %v269_v21, %v238_v22  ;;  %v313_v24 = vpop.f32.mrb[1].mxu1 }
 0x1ed   :  { %v241_v25 = vpop.f32.mrb[2].mxu1 }
 0x1ee   :  { %245 = vst [vmem:[#allocation8] sm:$0xff] %v239_v23  ;;  %v242_v26 = vadd.f32 %v269_v21, %v241_v25  ;;  %v314_v27 = vpop.f32.mrb[3].mxu1 }
 0x1f0   :  { %246 = vst [vmem:[#allocation8 + $0x8] sm:$0xff] %v242_v26 }
 0x1f1   :  { %412 = shalt.err (!%p409_p0)
}
 0x1f2   :  { %s413_s10 = scalar_lea.hbm %s544_s5, 256 }
 0x1f3   :  { %p414_p1 = scmp.ne.s32.totalorder %s544_s5, %s413_s10  ;;  %p417_p2 = scmp.lt.u32.totalorder %s413_s10, %s544_s5 }
 0x1f5   :  { %p419_p3 = pnand %p417_p2, %p414_p1 }
 0x1f7   :  { %422 = shalt.err (!%p419_p3)
}
 0x1f8   :  { %s437_s15 = smov 128   ;;  %s438_s16 = smov 8  }
 0x1f9   :  { %258 = dma.vmem_to_hbm [thread:$0]  %s253_s8, 256, %s544_s5, [#allocation4], %s437_s15, %s437_s15, %s438_s16  }
 0x1fa   :  { %427 = dma.done.wait [#allocation4], 256  }
 0x1fb   :  { %428 = vsyncadd [#allocation4], 4294967040 }
 0x1fc   :  { %262 = vsyncpa [#allocation3], 1 }
 0x1fd   :  { %263 = vsyncpa [#allocation6], 1 }
 0x1fe   :  { %264 = vsyncpa [#allocation4], 1 }

</bundles_post_ra>
